<compile_context>
chip_gen: v7x
topology: tpu7x:2x2x1
jax: 0.10.0
libtpu: 0.0.40
codegen_flags: <defaults>
</compile_context>

<pallas_src>
import functools

import jax
import jax.numpy as jnp
from jax.experimental import pallas as pl
from jax.experimental.pallas import tpu as pltpu


def _round_up(n, m):
    return ((n + m - 1) // m) * m


def _fused_dqn_kernel(*refs, num_hidden):
    """Fused MLP forward.

    refs = (x, [w_hidden, b_hidden,] w_last, b_last, out)
      x:        [TB, Din_pad]                   f32
      w_hidden: [num_hidden, Din_pad, Din_pad]  bf16
      b_hidden: [num_hidden, 1, Din_pad]        f32
      w_last:   [Din_pad, Dout_pad]             bf16
      b_last:   [1, Dout_pad]                   f32
      out:      [TB, Dout_pad]                  f32

    Zero padding keeps padded columns exactly zero through every hidden layer
    (0 @ W = 0, + 0 bias, ReLU(0) = 0), so valid columns match the nn.Linear
    result y = x @ W.T + b.
    """
    if num_hidden > 0:
        x_ref, wh_ref, bh_ref, wl_ref, bl_ref, o_ref = refs
    else:
        x_ref, wl_ref, bl_ref, o_ref = refs

    h = x_ref[...]                                  # f32 running activation
    for i in range(num_hidden):
        h = jnp.dot(h.astype(jnp.bfloat16), wh_ref[i],
                    preferred_element_type=jnp.float32) + bh_ref[i]
        h = jnp.maximum(h, 0.0)
    h = jnp.dot(h.astype(jnp.bfloat16), wl_ref[...],
                preferred_element_type=jnp.float32) + bl_ref[...]
    o_ref[...] = h.astype(o_ref.dtype)


def init_dqn_params(key, obs_params, outputs, num_layers):
    """Deterministic init mirroring DQN.__init__ (PyTorch [out, in] layout)."""
    d_in = 1
    for i in obs_params:
        d_in *= i
    params = []
    for i in range(num_layers):
        d_out = outputs if i == num_layers - 1 else d_in
        key, kw, kb = jax.random.split(key, 3)
        bound = 1.0 / float(d_in) ** 0.5
        w = jax.random.uniform(kw, (d_out, d_in), jnp.float32, -bound, bound)
        b = jax.random.uniform(kb, (d_out,), jnp.float32, -bound, bound)
        params.append((w, b))
    return params


def prepare_params(params):
    """One-time prep (kept out of the forward path):
       - transpose PyTorch [out, in] -> [in, out],
       - zero-pad each feature dim independently to a multiple of 128,
       - cast weights to bf16 (MXU-native); biases stay f32,
       - stack the identically shaped hidden layers into single arrays."""
    d_in = params[0][0].shape[1]
    d_out = params[-1][0].shape[0]
    din_pad = _round_up(d_in, 128)
    dout_pad = _round_up(d_out, 128)

    def pad_wb(w, b, rows, cols):
        o, i = w.shape
        w_p = jnp.zeros((rows, cols), jnp.float32).at[:i, :o].set(w.T)
        b_p = jnp.zeros((1, cols), jnp.float32).at[0, :o].set(b)
        return w_p.astype(jnp.bfloat16), b_p

    hw, hb = [], []
    for w, b in params[:-1]:                      # hidden layers: d_in -> d_in
        w_p, b_p = pad_wb(w, b, din_pad, din_pad)
        hw.append(w_p)
        hb.append(b_p)
    wl, bl = pad_wb(params[-1][0], params[-1][1], din_pad, dout_pad)

    return {
        "wh": jnp.stack(hw) if hw else None,      # [L-1, din_pad, din_pad] bf16
        "bh": jnp.stack(hb) if hb else None,      # [L-1, 1, din_pad]       f32
        "wl": wl,                                 # [din_pad, dout_pad]     bf16
        "bl": bl,                                 # [1, dout_pad]           f32
        "num_hidden": len(hw),
        "d_in": d_in, "d_out": d_out,
        "din_pad": din_pad, "dout_pad": dout_pad,
    }


def _choose_batch_tiling(B, sublane=16, max_tb=512):
    """Pick (batch_tile, padded_batch).

    Preference order: (1) >= 2 grid steps when possible so the "parallel" grid
    axis actually splits across v7x's two TensorCores, (2) minimal padded batch
    (no pad-513-rows-to-1024 blow-up), (3) larger tiles (less per-step
    overhead).  Everything is a multiple of 16 so bf16 operands pack cleanly
    into sublanes.
    """
    b16 = _round_up(max(int(B), 1), sublane)
    half = _round_up((b16 + 1) // 2, sublane)
    cands = {c for c in (128, 256, 512, half, b16) if 0 < c <= min(b16, max_tb)}
    best_key, best = None, None
    for tb in sorted(cands):
        b_pad = _round_up(b16, tb)
        grid = b_pad // tb
        key = (0 if grid >= 2 else 1, b_pad, -tb)
        if best_key is None or key < best_key:
            best_key, best = key, (tb, b_pad)
    return best


def dqn_forward_fused(prep, x):
    """Fused DQN forward: one pallas_call for the whole MLP."""
    B, d_in = x.shape
    assert d_in == prep["d_in"], (d_in, prep["d_in"])
    din_pad, dout_pad = prep["din_pad"], prep["dout_pad"]
    num_hidden = prep["num_hidden"]

    tb, b_pad = _choose_batch_tiling(B)
    grid = (b_pad // tb,)

    # Pad batch (tile multiple, itself a multiple of 16) and features (128
    # lanes).  jnp.pad lets XLA fuse the padding instead of materializing a
    # separate zeros-then-scatter pass.
    # TODO(synk): for very large B, zero the ragged tail tile in-kernel instead
    # of padding rows in the wrapper.
    x_pad = jnp.pad(x, ((0, b_pad - B), (0, din_pad - d_in)))

    operands = [x_pad]
    if num_hidden:
        operands += [prep["wh"], prep["bh"]]
    operands += [prep["wl"], prep["bl"]]

    # Explicit VMEM budget: resident weights/biases (x2 in case the
    # double-buffer fallback is taken) + double-buffered x/out tiles + in-kernel
    # f32 activation temporaries + headroom.  Documents the 16/32 MiB default
    # scoped limits and the v7x 64 MiB physical ceiling.
    w_bytes = sum(int(a.size) * a.dtype.itemsize for a in operands[1:])
    tile_bytes = 2 * tb * din_pad * 4 + 2 * tb * dout_pad * 4
    act_bytes = 4 * tb * max(din_pad, dout_pad) * 4
    vmem_limit = 2 * w_bytes + tile_bytes + act_bytes + (4 << 20)
    vmem_limit = int(min(max(vmem_limit, 16 << 20), 64 << 20))
    assert 2 * w_bytes + tile_bytes < (48 << 20), (
        "resident weights too large for a single fused kernel; split layers")

    flops = 2 * b_pad * (num_hidden * din_pad * din_pad + din_pad * dout_pad)
    bytes_accessed = 4 * b_pad * (din_pad + dout_pad) + w_bytes

    x_spec = pl.BlockSpec((tb, din_pad), lambda i: (i, 0))
    out_spec = pl.BlockSpec((tb, dout_pad), lambda i: (i, 0))

    def weight_spec(shape, single_buffer):
        kwargs = {}
        if single_buffer and hasattr(pl, "Buffered"):
            # Block index never changes across the batch grid -> one buffer is
            # enough; halves resident-weight VMEM vs default double-buffering.
            kwargs["pipeline_mode"] = pl.Buffered(1)
        return pl.BlockSpec(shape, lambda *_: (0,) * len(shape), **kwargs)

    def run(single_buffer_weights):
        in_specs = [x_spec] + [
            weight_spec(a.shape, single_buffer_weights) for a in operands[1:]
        ]
        kernel = functools.partial(_fused_dqn_kernel, num_hidden=num_hidden)
        return pl.pallas_call(
            kernel,
            out_shape=jax.ShapeDtypeStruct((b_pad, dout_pad), jnp.float32),
            grid_spec=pl.GridSpec(grid=grid, in_specs=in_specs,
                                  out_specs=out_spec),
            compiler_params=pltpu.CompilerParams(
                dimension_semantics=("parallel",),
                vmem_limit_bytes=vmem_limit,
            ),
            cost_estimate=pl.CostEstimate(
                flops=flops, transcendentals=0,
                bytes_accessed=bytes_accessed),
        )(*operands)

    try:
        out_pad = run(True)
    except Exception:
        # Some jax builds reject single-buffered blocks (Buffered(1)); fall
        # back to default double-buffering (identical results).
        out_pad = run(False)

    return out_pad[:B, :prep["d_out"]]


def dqn_forward_ref(params, x):
    n = len(params)
    for i, (w, b) in enumerate(params):
        x = x @ w.T + b
        if i < n - 1:
            x = jnp.maximum(x, 0.0)
    return x


if __name__ == "__main__":
    key = jax.random.PRNGKey(0)
    obs_params = (4, 8)   # linear_input_size = 32
    outputs = 8
    num_layers = 3
    batch = 2

    kp, kx = jax.random.split(key)
    params = init_dqn_params(kp, obs_params, outputs, num_layers)

    d_in = 1
    for i in obs_params:
        d_in *= i
    x = jax.random.normal(kx, (batch, d_in), jnp.float32)

    # One-time parameter prep (transpose + per-layer pad + bf16 + stack),
    # kept out of the forward path.
    prep = prepare_params(params)

    out = dqn_forward_fused(prep, x)
    out = jax.block_until_ready(out)

    ref = dqn_forward_ref(params, x)
    assert out.shape == (batch, outputs), out.shape
    # Weights go through the MXU in bf16 (f32 accumulate), so compare against
    # the f32 reference with a bf16-appropriate tolerance.
    assert jnp.allclose(out, ref, atol=5e-2, rtol=5e-2), float(
        jnp.max(jnp.abs(out - ref)))

    print("KERNEL_OK")
</pallas_src>

<mosaic_0001>
module attributes {stable_mosaic.version = 11 : i64} {
  func.func @_fused_dqn_kernel(%arg0: i32, %arg1: memref<16x128xf32, #tpu.memory_space<vmem>>, %arg2: memref<2x128x128xbf16, #tpu.memory_space<vmem>>, %arg3: memref<2x1x128xf32, #tpu.memory_space<vmem>>, %arg4: memref<128x128xbf16, #tpu.memory_space<vmem>>, %arg5: memref<1x128xf32, #tpu.memory_space<vmem>>, %arg6: memref<16x128xf32, #tpu.memory_space<vmem>>) attributes {dimension_semantics = [#tpu.dimension_semantics<parallel>], iteration_bounds = array<i64: 1>, scalar_prefetch = 0 : i64, scratch_operands = 0 : i64, tpu.core_type = #tpu.core_type<tc>, window_params = [{transform_indices = @transform_0, window_bounds = array<i64: 16, 128>}, {pipeline_mode = #tpu.pipeline_mode<synchronous>, transform_indices = @transform_1, window_bounds = array<i64: 2, 128, 128>}, {pipeline_mode = #tpu.pipeline_mode<synchronous>, transform_indices = @transform_2, window_bounds = array<i64: 2, 1, 128>}, {pipeline_mode = #tpu.pipeline_mode<synchronous>, transform_indices = @transform_3, window_bounds = array<i64: 128, 128>}, {pipeline_mode = #tpu.pipeline_mode<synchronous>, transform_indices = @transform_4, window_bounds = array<i64: 1, 128>}, {transform_indices = @transform_5, window_bounds = array<i64: 16, 128>}]} {
    %c0 = arith.constant 0 : index
    %c0_0 = arith.constant 0 : index
    %0 = vector.load %arg1[%c0, %c0_0] : memref<16x128xf32, #tpu.memory_space<vmem>>, vector<16x128xf32>
    %1 = arith.truncf %0 : vector<16x128xf32> to vector<16x128xbf16>
    %c0_1 = arith.constant 0 : index
    %c0_2 = arith.constant 0 : index
    %c0_3 = arith.constant 0 : index
    %2 = vector.load %arg2[%c0_1, %c0_2, %c0_3] : memref<2x128x128xbf16, #tpu.memory_space<vmem>>, vector<1x128x128xbf16>
    %3 = vector.shape_cast %2 : vector<1x128x128xbf16> to vector<128x128xbf16>
    %cst = arith.constant dense<0.000000e+00> : vector<16x128xf32>
    %4 = tpu.matmul %1, %3, %cst {dimension_numbers = #tpu.dot_dimension_numbers<[1], [0], [0], [1], [0, 0, 1, 1], [], []>} : vector<16x128xbf16>, vector<128x128xbf16>, vector<16x128xf32> -> vector<16x128xf32>
    %c0_4 = arith.constant 0 : index
    %c0_5 = arith.constant 0 : index
    %c0_6 = arith.constant 0 : index
    %5 = vector.load %arg3[%c0_4, %c0_5, %c0_6] : memref<2x1x128xf32, #tpu.memory_space<vmem>>, vector<1x1x128xf32>
    %6 = vector.shape_cast %5 : vector<1x1x128xf32> to vector<1x128xf32>
    %7 = vector.broadcast %6 : vector<1x128xf32> to vector<16x128xf32>
    %8 = arith.addf %4, %7 : vector<16x128xf32>
    %cst_7 = arith.constant 0.000000e+00 : f32
    %9 = vector.broadcast %cst_7 : f32 to vector<16x128xf32>
    %10 = arith.maximumf %8, %9 : vector<16x128xf32>
    %11 = arith.truncf %10 : vector<16x128xf32> to vector<16x128xbf16>
    %c1 = arith.constant 1 : index
    %c0_8 = arith.constant 0 : index
    %c0_9 = arith.constant 0 : index
    %12 = vector.load %arg2[%c1, %c0_8, %c0_9] : memref<2x128x128xbf16, #tpu.memory_space<vmem>>, vector<1x128x128xbf16>
    %13 = vector.shape_cast %12 : vector<1x128x128xbf16> to vector<128x128xbf16>
    %cst_10 = arith.constant dense<0.000000e+00> : vector<16x128xf32>
    %14 = tpu.matmul %11, %13, %cst_10 {dimension_numbers = #tpu.dot_dimension_numbers<[1], [0], [0], [1], [0, 0, 1, 1], [], []>} : vector<16x128xbf16>, vector<128x128xbf16>, vector<16x128xf32> -> vector<16x128xf32>
    %c1_11 = arith.constant 1 : index
    %c0_12 = arith.constant 0 : index
    %c0_13 = arith.constant 0 : index
    %15 = vector.load %arg3[%c1_11, %c0_12, %c0_13] : memref<2x1x128xf32, #tpu.memory_space<vmem>>, vector<1x1x128xf32>
    %16 = vector.shape_cast %15 : vector<1x1x128xf32> to vector<1x128xf32>
    %17 = vector.broadcast %16 : vector<1x128xf32> to vector<16x128xf32>
    %18 = arith.addf %14, %17 : vector<16x128xf32>
    %cst_14 = arith.constant 0.000000e+00 : f32
    %19 = vector.broadcast %cst_14 : f32 to vector<16x128xf32>
    %20 = arith.maximumf %18, %19 : vector<16x128xf32>
    %21 = arith.truncf %20 : vector<16x128xf32> to vector<16x128xbf16>
    %c0_15 = arith.constant 0 : index
    %c0_16 = arith.constant 0 : index
    %22 = vector.load %arg4[%c0_15, %c0_16] : memref<128x128xbf16, #tpu.memory_space<vmem>>, vector<128x128xbf16>
    %cst_17 = arith.constant dense<0.000000e+00> : vector<16x128xf32>
    %23 = tpu.matmul %21, %22, %cst_17 {dimension_numbers = #tpu.dot_dimension_numbers<[1], [0], [0], [1], [0, 0, 1, 1], [], []>} : vector<16x128xbf16>, vector<128x128xbf16>, vector<16x128xf32> -> vector<16x128xf32>
    %c0_18 = arith.constant 0 : index
    %c0_19 = arith.constant 0 : index
    %24 = vector.load %arg5[%c0_18, %c0_19] : memref<1x128xf32, #tpu.memory_space<vmem>>, vector<1x128xf32>
    %25 = vector.broadcast %24 : vector<1x128xf32> to vector<16x128xf32>
    %26 = arith.addf %23, %25 : vector<16x128xf32>
    %c0_20 = arith.constant 0 : index
    %c0_21 = arith.constant 0 : index
    %27 = vector.load %arg6[%c0_20, %c0_21] : memref<16x128xf32, #tpu.memory_space<vmem>>, vector<16x128xf32>
    tpu.vector_store %arg6[%c0_20, %c0_21], %26 {strides = array<i32>} : memref<16x128xf32, #tpu.memory_space<vmem>>, vector<16x128xf32>,
    return
  }
  func.func @transform_0(%arg0: i32) -> (i32, i32) {
    %c0_i32 = arith.constant 0 : i32
    %c0_i32_0 = arith.constant 0 : i32
    return %arg0, %c0_i32 : i32, i32
  }
  func.func @transform_1(%arg0: i32) -> (i32, i32, i32) {
    %c0_i32 = arith.constant 0 : i32
    %c0_i32_0 = arith.constant 0 : i32
    %c0_i32_1 = arith.constant 0 : i32
    %c0_i32_2 = arith.constant 0 : i32
    return %c0_i32, %c0_i32_0, %c0_i32_1 : i32, i32, i32
  }
  func.func @transform_2(%arg0: i32) -> (i32, i32, i32) {
    %c0_i32 = arith.constant 0 : i32
    %c0_i32_0 = arith.constant 0 : i32
    %c0_i32_1 = arith.constant 0 : i32
    %c0_i32_2 = arith.constant 0 : i32
    return %c0_i32, %c0_i32_0, %c0_i32_1 : i32, i32, i32
  }
  func.func @transform_3(%arg0: i32) -> (i32, i32) {
    %c0_i32 = arith.constant 0 : i32
    %c0_i32_0 = arith.constant 0 : i32
    %c0_i32_1 = arith.constant 0 : i32
    return %c0_i32, %c0_i32_0 : i32, i32
  }
  func.func @transform_4(%arg0: i32) -> (i32, i32) {
    %c0_i32 = arith.constant 0 : i32
    %c0_i32_0 = arith.constant 0 : i32
    %c0_i32_1 = arith.constant 0 : i32
    return %c0_i32, %c0_i32_0 : i32, i32
  }
  func.func @transform_5(%arg0: i32) -> (i32, i32) {
    %c0_i32 = arith.constant 0 : i32
    %c0_i32_0 = arith.constant 0 : i32
    return %arg0, %c0_i32 : i32, i32
  }
}

module attributes {stable_mosaic.version = 11 : i64} {
  func.func @_fused_dqn_kernel(%arg0: i32, %arg1: memref<16x128xf32, #tpu.memory_space<vmem>>, %arg2: memref<2x128x128xbf16, #tpu.memory_space<vmem>>, %arg3: memref<2x1x128xf32, #tpu.memory_space<vmem>>, %arg4: memref<128x128xbf16, #tpu.memory_space<vmem>>, %arg5: memref<1x128xf32, #tpu.memory_space<vmem>>, %arg6: memref<16x128xf32, #tpu.memory_space<vmem>>) attributes {dimension_semantics = [#tpu.dimension_semantics<parallel>], iteration_bounds = array<i64: 1>, scalar_prefetch = 0 : i64, scratch_operands = 0 : i64, tpu.core_type = #tpu.core_type<tc>, window_params = [{transform_indices = @transform_0, window_bounds = array<i64: 16, 128>}, {pipeline_mode = #tpu.pipeline_mode<synchronous>, transform_indices = @transform_1, window_bounds = array<i64: 2, 128, 128>}, {pipeline_mode = #tpu.pipeline_mode<synchronous>, transform_indices = @transform_2, window_bounds = array<i64: 2, 1, 128>}, {pipeline_mode = #tpu.pipeline_mode<synchronous>, transform_indices = @transform_3, window_bounds = array<i64: 128, 128>}, {pipeline_mode = #tpu.pipeline_mode<synchronous>, transform_indices = @transform_4, window_bounds = array<i64: 1, 128>}, {transform_indices = @transform_5, window_bounds = array<i64: 16, 128>}]} {
    %c0 = arith.constant 0 : index
    %c0_0 = arith.constant 0 : index
    %0 = vector.load %arg1[%c0, %c0_0] : memref<16x128xf32, #tpu.memory_space<vmem>>, vector<16x128xf32>
    %1 = arith.truncf %0 : vector<16x128xf32> to vector<16x128xbf16>
    %c0_1 = arith.constant 0 : index
    %c0_2 = arith.constant 0 : index
    %c0_3 = arith.constant 0 : index
    %2 = vector.load %arg2[%c0_1, %c0_2, %c0_3] : memref<2x128x128xbf16, #tpu.memory_space<vmem>>, vector<1x128x128xbf16>
    %3 = vector.shape_cast %2 : vector<1x128x128xbf16> to vector<128x128xbf16>
    %cst = arith.constant dense<0.000000e+00> : vector<16x128xf32>
    %4 = tpu.matmul %1, %3, %cst {dimension_numbers = #tpu.dot_dimension_numbers<[1], [0], [0], [1], [0, 0, 1, 1], [], []>} : vector<16x128xbf16>, vector<128x128xbf16>, vector<16x128xf32> -> vector<16x128xf32>
    %c0_4 = arith.constant 0 : index
    %c0_5 = arith.constant 0 : index
    %c0_6 = arith.constant 0 : index
    %5 = vector.load %arg3[%c0_4, %c0_5, %c0_6] : memref<2x1x128xf32, #tpu.memory_space<vmem>>, vector<1x1x128xf32>
    %6 = vector.shape_cast %5 : vector<1x1x128xf32> to vector<1x128xf32>
    %7 = vector.broadcast %6 : vector<1x128xf32> to vector<16x128xf32>
    %8 = arith.addf %4, %7 : vector<16x128xf32>
    %cst_7 = arith.constant 0.000000e+00 : f32
    %9 = vector.broadcast %cst_7 : f32 to vector<16x128xf32>
    %10 = arith.maximumf %8, %9 : vector<16x128xf32>
    %11 = arith.truncf %10 : vector<16x128xf32> to vector<16x128xbf16>
    %c1 = arith.constant 1 : index
    %c0_8 = arith.constant 0 : index
    %c0_9 = arith.constant 0 : index
    %12 = vector.load %arg2[%c1, %c0_8, %c0_9] : memref<2x128x128xbf16, #tpu.memory_space<vmem>>, vector<1x128x128xbf16>
    %13 = vector.shape_cast %12 : vector<1x128x128xbf16> to vector<128x128xbf16>
    %cst_10 = arith.constant dense<0.000000e+00> : vector<16x128xf32>
    %14 = tpu.matmul %11, %13, %cst_10 {dimension_numbers = #tpu.dot_dimension_numbers<[1], [0], [0], [1], [0, 0, 1, 1], [], []>} : vector<16x128xbf16>, vector<128x128xbf16>, vector<16x128xf32> -> vector<16x128xf32>
    %c1_11 = arith.constant 1 : index
    %c0_12 = arith.constant 0 : index
    %c0_13 = arith.constant 0 : index
    %15 = vector.load %arg3[%c1_11, %c0_12, %c0_13] : memref<2x1x128xf32, #tpu.memory_space<vmem>>, vector<1x1x128xf32>
    %16 = vector.shape_cast %15 : vector<1x1x128xf32> to vector<1x128xf32>
    %17 = vector.broadcast %16 : vector<1x128xf32> to vector<16x128xf32>
    %18 = arith.addf %14, %17 : vector<16x128xf32>
    %cst_14 = arith.constant 0.000000e+00 : f32
    %19 = vector.broadcast %cst_14 : f32 to vector<16x128xf32>
    %20 = arith.maximumf %18, %19 : vector<16x128xf32>
    %21 = arith.truncf %20 : vector<16x128xf32> to vector<16x128xbf16>
    %c0_15 = arith.constant 0 : index
    %c0_16 = arith.constant 0 : index
    %22 = vector.load %arg4[%c0_15, %c0_16] : memref<128x128xbf16, #tpu.memory_space<vmem>>, vector<128x128xbf16>
    %cst_17 = arith.constant dense<0.000000e+00> : vector<16x128xf32>
    %23 = tpu.matmul %21, %22, %cst_17 {dimension_numbers = #tpu.dot_dimension_numbers<[1], [0], [0], [1], [0, 0, 1, 1], [], []>} : vector<16x128xbf16>, vector<128x128xbf16>, vector<16x128xf32> -> vector<16x128xf32>
    %c0_18 = arith.constant 0 : index
    %c0_19 = arith.constant 0 : index
    %24 = vector.load %arg5[%c0_18, %c0_19] : memref<1x128xf32, #tpu.memory_space<vmem>>, vector<1x128xf32>
    %25 = vector.broadcast %24 : vector<1x128xf32> to vector<16x128xf32>
    %26 = arith.addf %23, %25 : vector<16x128xf32>
    %c0_20 = arith.constant 0 : index
    %c0_21 = arith.constant 0 : index
    %27 = vector.load %arg6[%c0_20, %c0_21] : memref<16x128xf32, #tpu.memory_space<vmem>>, vector<16x128xf32>
    tpu.vector_store %arg6[%c0_20, %c0_21], %26 {strides = array<i32>} : memref<16x128xf32, #tpu.memory_space<vmem>>, vector<16x128xf32>,
    return
  }
  func.func @transform_0(%arg0: i32) -> (i32, i32) {
    %c0_i32 = arith.constant 0 : i32
    %c0_i32_0 = arith.constant 0 : i32
    return %arg0, %c0_i32 : i32, i32
  }
  func.func @transform_1(%arg0: i32) -> (i32, i32, i32) {
    %c0_i32 = arith.constant 0 : i32
    %c0_i32_0 = arith.constant 0 : i32
    %c0_i32_1 = arith.constant 0 : i32
    %c0_i32_2 = arith.constant 0 : i32
    return %c0_i32, %c0_i32_0, %c0_i32_1 : i32, i32, i32
  }
  func.func @transform_2(%arg0: i32) -> (i32, i32, i32) {
    %c0_i32 = arith.constant 0 : i32
    %c0_i32_0 = arith.constant 0 : i32
    %c0_i32_1 = arith.constant 0 : i32
    %c0_i32_2 = arith.constant 0 : i32
    return %c0_i32, %c0_i32_0, %c0_i32_1 : i32, i32, i32
  }
  func.func @transform_3(%arg0: i32) -> (i32, i32) {
    %c0_i32 = arith.constant 0 : i32
    %c0_i32_0 = arith.constant 0 : i32
    %c0_i32_1 = arith.constant 0 : i32
    return %c0_i32, %c0_i32_0 : i32, i32
  }
  func.func @transform_4(%arg0: i32) -> (i32, i32) {
    %c0_i32 = arith.constant 0 : i32
    %c0_i32_0 = arith.constant 0 : i32
    %c0_i32_1 = arith.constant 0 : i32
    return %c0_i32, %c0_i32_0 : i32, i32
  }
  func.func @transform_5(%arg0: i32) -> (i32, i32) {
    %c0_i32 = arith.constant 0 : i32
    %c0_i32_0 = arith.constant 0 : i32
    return %arg0, %c0_i32 : i32, i32
  }
}

</mosaic_0001>

<bundles_post_ra>
// kernel: tpu_custom_call.1
= control target key start
LH: loop header
LB: loop body
LE: loop exit
PB: predicated region body
PF: predicated region fallthrough
CT: control target
= control target key end

     0   :  { %10 = vsyncpa [#allocation3], 0  ;;  %s812_s0 = inlined_call_operand.hbm [shape: f32[16,128], index: 0, kind: input, shape index: {}]   ;;  %s813_s1 = inlined_call_operand.hbm [shape: bf16[2,128,128], index: 1, kind: input, shape index: {}]   ;;  %s814_s2 = inlined_call_operand.vmem [shape: f32[2,1,128], index: 2, kind: input, shape index: {}]   ;;  %s815_s3 = inlined_call_operand.hbm [shape: bf16[128,128], index: 3, kind: input, shape index: {}]   ;;  %s816_s4 = inlined_call_operand.vmem [shape: f32[1,128], index: 4, kind: input, shape index: {}]   ;;  %s817_s5 = inlined_call_operand.hbm [shape: f32[16,128], index: 5, kind: output, shape index: {}]  }
   0x1   :  { %11 = vsyncpa [#allocation6], 0 }
   0x2   :  { %12 = vsyncpa [#allocation4], 0  ;;  %s673_s18 = smov [#allocation5]   ;;  %s579_s22 = scalar_lea.hbm %s813_s1, 2048 }
   0x3   :  { %s30_s19 = sshll.u32 %s673_s18, 4  ;;  %p580_p0 = scmp.ne.s32.totalorder %s813_s1, %s579_s22  ;;  %s31_s19 = int_to_ptr.vmem [resolvable:$true] %s30_s19 }
   0x4   :  { %p583_p1 = scmp.lt.u32.totalorder %s579_s22, %s813_s1 }
   0x6   :  { %p585_p2 = pnand %p583_p1, %p580_p0 }
   0x8   :  { %588 = shalt.err (!%p585_p2)
}
   0x9   :  { %s589_s27 = scalar_lea.vmem %s31_s19, 2048  ;;  %p594_p4 = scmp.lt.s32.totalorder %s31_s19, %s31_s19 }
   0xa   :  { %p590_p3 = scmp.ne.s32.totalorder %s31_s19, %s589_s27  ;;  %p595_p5 = scmp.lt.s32.totalorder %s589_s27, %s589_s27 }
   0xc   :  { %p596_p6 = por %p595_p5, %p594_p4 }
   0xe   :  { %p597_p7 = pnand %p596_p6, %p590_p3 }
  0x10   :  { %600 = shalt.err (!%p597_p7)
}
  0x11   :  { %s674_s28 = smov 64   ;;  %s675_s29 = smov 4  }
  0x12   :  { %36 = dma.hbm_to_vmem [thread:$0]  %s813_s1, 2048, %s31_s19, [#allocation6], %s674_s28, %s674_s28, %s675_s29  }
  0x13   :  { %s676_s7 = smov [#allocation2]   ;;  %s601_s11 = scalar_lea.hbm %s812_s0, 256 }
  0x14   :  { %s18_s8 = sshll.u32 %s676_s7, 4  ;;  %p602_p8 = scmp.ne.s32.totalorder %s812_s0, %s601_s11  ;;  %s19_s8 = int_to_ptr.vmem [resolvable:$true] %s18_s8 }
  0x15   :  { %p605_p9 = scmp.lt.u32.totalorder %s601_s11, %s812_s0 }
  0x17   :  { %p607_p10 = pnand %p605_p9, %p602_p8 }
  0x19   :  { %610 = shalt.err (!%p607_p10)
}
  0x1a   :  { %s611_s16 = scalar_lea.vmem %s19_s8, 256  ;;  %p616_p12 = scmp.lt.s32.totalorder %s19_s8, %s19_s8 }
  0x1b   :  { %p612_p11 = scmp.ne.s32.totalorder %s19_s8, %s611_s16  ;;  %p617_p13 = scmp.lt.s32.totalorder %s611_s16, %s611_s16 }
  0x1d   :  { %p618_p0 = por %p617_p13, %p616_p12 }
  0x1f   :  { %p619_p1 = pnand %p618_p0, %p612_p11 }
  0x21   :  { %622 = shalt.err (!%p619_p1)
}
  0x22   :  { %s677_s1 = smov 128   ;;  %s678_s17 = smov 8  }
  0x23   :  { %24 = dma.hbm_to_vmem [thread:$0]  %s812_s0, 256, %s19_s8, [#allocation3], %s677_s1, %s677_s1, %s678_s17  }
  0x24   :  { %s679_s20 = smov [#allocation7]   ;;  %s623_s24 = scalar_lea.hbm %s815_s3, 1024 }
  0x25   :  { %s44_s21 = sshll.u32 %s679_s20, 4  ;;  %p624_p2 = scmp.ne.s32.totalorder %s815_s3, %s623_s24  ;;  %s45_s21 = int_to_ptr.vmem [resolvable:$true] %s44_s21 }
  0x26   :  { %p627_p3 = scmp.lt.u32.totalorder %s623_s24, %s815_s3 }
  0x28   :  { %p629_p4 = pnand %p627_p3, %p624_p2 }
  0x2a   :  { %632 = shalt.err (!%p629_p4)
}
  0x2b   :  { %s633_s6 = scalar_lea.vmem %s45_s21, 1024  ;;  %p638_p6 = scmp.lt.s32.totalorder %s45_s21, %s45_s21 }
  0x2c   :  { %p634_p5 = scmp.ne.s32.totalorder %s45_s21, %s633_s6  ;;  %p639_p7 = scmp.lt.s32.totalorder %s633_s6, %s633_s6 }
  0x2e   :  { %p640_p8 = por %p639_p7, %p638_p6 }
  0x30   :  { %p641_p9 = pnand %p640_p8, %p634_p5 }
  0x32   :  { %644 = shalt.err (!%p641_p9)
}
  0x33   :  { %50 = dma.hbm_to_vmem [thread:$0]  %s815_s3, 1024, %s45_s21, [#allocation6], %s674_s28, %s674_s28, %s675_s29  }
  0x34   :  { %667 = dma.done.wait [#allocation3], 256  }
  0x35   :  { %668 = vsyncadd [#allocation3], 4294967040 }
  0x36   :  { %669 = dma.done.wait [#allocation6], 3072  }
  0x37   :  { %670 = vsyncadd [#allocation6], 4294964224  ;;  %v680_v0 = vmov 0.0   ;;  %vm681_vm0 = vmmov 0   ;;  %v555_v1 = vld [vmem:[#allocation5] sm:$0xff]   ;;  %v556_v2 = vld [vmem:[#allocation5 + $0x8] sm:$0xff]  }
  0x38   :  { %485 = vmatprep.subr.bf16.mxu0 %v680_v0  ;;  %501 = vmatprep.mubr.msk.bf16.mxu0 %vm681_vm0, %v680_v0  ;;  %v557_v3 = vld [vmem:[#allocation5 + $0x10] sm:$0xff]   ;;  %v563_v4 = vld [vmem:[#allocation5 + $0x40] sm:$0xff]   ;;  %v558_v5 = vld [vmem:[#allocation5 + $0x18] sm:$0xff]   ;;  %s682_s11 = smov [#allocation8]  }
  0x39   :  { %505 = vmatprep.subr.bf16.mxu1 %v680_v0  ;;  %521 = vmatprep.mubr.msk.bf16.mxu1 %vm681_vm0, %v680_v0  ;;  %v564_v6 = vld [vmem:[#allocation5 + $0x48] sm:$0xff]   ;;  %v559_v7 = vld [vmem:[#allocation5 + $0x20] sm:$0xff]   ;;  %v565_v8 = vld [vmem:[#allocation5 + $0x50] sm:$0xff]   ;;  %s417_s12 = sshll.u32 %s682_s11, 4  ;;  %s418_s12 = int_to_ptr.vmem [resolvable:$true] %s417_s12 }
  0x3a   :  { %486 = vmatpush3.bf16.msra.mxu0 %v555_v1  ;;  %506 = vmatpush3.bf16.msra.mxu1 %v563_v4  ;;  %v560_v9 = vld [vmem:[#allocation5 + $0x28] sm:$0xff]   ;;  %v566_v10 = vld [vmem:[#allocation5 + $0x58] sm:$0xff]   ;;  %v561_v11 = vld [vmem:[#allocation5 + $0x30] sm:$0xff]   ;;  %p650_p11 = scmp.lt.s32.totalorder %s418_s12, %s418_s12 }
  0x3b   :  { %487 = vmatprep.subr.bf16.mxu0 %v680_v0  ;;  %507 = vmatprep.subr.bf16.mxu1 %v680_v0  ;;  %v567_v12 = vld [vmem:[#allocation5 + $0x60] sm:$0xff]   ;;  %v562_v13 = vld [vmem:[#allocation5 + $0x38] sm:$0xff]   ;;  %v63_v14 = vld [vmem:[#allocation2] sm:$0xff] }
  0x3c   :  { %v64_v15 = vld [vmem:[#allocation2 + $0x8] sm:$0xff]  ;;  %v568_v16 = vld [vmem:[#allocation5 + $0x68] sm:$0xff]   ;;  %v569_v18 = vld [vmem:[#allocation5 + $0x70] sm:$0xff]  }
  0x3d   :  { %v65_v17 = vpack.c.bf16 %v64_v15, %v63_v14  ;;  %v570_v19 = vld [vmem:[#allocation5 + $0x78] sm:$0xff]   ;;  %v571_v20 = vld [vmem:[#allocation7] sm:$0xff]   ;;  %v572_v21 = vld [vmem:[#allocation7 + $0x8] sm:$0xff]  }
  0x3e   :  { %488 = vmatpush3.bf16.msra.mxu0 %v556_v2  ;;  %508 = vmatpush3.bf16.msra.mxu1 %v564_v6  ;;  %v573_v22 = vld [vmem:[#allocation7 + $0x10] sm:$0xff]   ;;  %v574_v23 = vld [vmem:[#allocation7 + $0x18] sm:$0xff]   ;;  %v575_v24 = vld [vmem:[#allocation7 + $0x20] sm:$0xff]  }
  0x3f   :  { %489 = vmatprep.subr.bf16.mxu0 %v680_v0  ;;  %509 = vmatprep.subr.bf16.mxu1 %v680_v0  ;;  %v576_v25 = vld [vmem:[#allocation7 + $0x28] sm:$0xff]   ;;  %v430_v26 = vld [vmem:[%s814_s2] ss:$0 sm:$0xff]  ;;  %v578_v37 = vld [vmem:[#allocation7 + $0x38] sm:$0xff]  }
  0x40   :  { %v577_v36 = vld [vmem:[#allocation7 + $0x30] sm:$0xff]  }
  0x41   :  { %v440_v38 = vld [vmem:[%s814_s2 + $0x1] ss:$0 sm:$0xff]  ;;  %v449_v48 = vld [vmem:[%s816_s4] ss:$0 sm:$0xff]  ;;  %s645_s2 = scalar_lea.vmem %s418_s12, 256 }
  0x42   :  { %490 = vmatpush3.bf16.msra.mxu0 %v557_v3  ;;  %510 = vmatpush3.bf16.msra.mxu1 %v565_v8  ;;  %p646_p10 = scmp.ne.s32.totalorder %s418_s12, %s645_s2  ;;  %p651_p12 = scmp.lt.s32.totalorder %s645_s2, %s645_s2 }
  0x43   :  { %491 = vmatprep.subr.bf16.mxu0 %v680_v0  ;;  %511 = vmatprep.subr.bf16.mxu1 %v680_v0 }
  0x44   :  { %p652_p13 = por %p651_p12, %p650_p11 }
  0x46   :  { %492 = vmatpush3.bf16.msra.mxu0 %v558_v5  ;;  %512 = vmatpush3.bf16.msra.mxu1 %v566_v10  ;;  %p653_p0 = pnand %p652_p13, %p646_p10 }
  0x47   :  { %493 = vmatprep.subr.bf16.mxu0 %v680_v0  ;;  %513 = vmatprep.subr.bf16.mxu1 %v680_v0 }
  0x4a   :  { %494 = vmatpush3.bf16.msra.mxu0 %v559_v7  ;;  %514 = vmatpush3.bf16.msra.mxu1 %v567_v12 }
  0x4b   :  { %495 = vmatprep.subr.bf16.mxu0 %v680_v0  ;;  %515 = vmatprep.subr.bf16.mxu1 %v680_v0 }
  0x4e   :  { %496 = vmatpush3.bf16.msra.mxu0 %v560_v9  ;;  %516 = vmatpush3.bf16.msra.mxu1 %v568_v16 }
  0x4f   :  { %497 = vmatprep.subr.bf16.mxu0 %v680_v0  ;;  %517 = vmatprep.subr.bf16.mxu1 %v680_v0 }
  0x52   :  { %498 = vmatpush3.bf16.msra.mxu0 %v561_v11  ;;  %518 = vmatpush3.bf16.msra.mxu1 %v569_v18 }
  0x53   :  { %499 = vmatprep.subr.bf16.mxu0 %v680_v0  ;;  %519 = vmatprep.subr.bf16.mxu1 %v680_v0 }
  0x56   :  { %500 = vmatpush3.bf16.msra.mxu0 %v562_v13  ;;  %520 = vmatpush3.bf16.msra.mxu1 %v570_v19 }
  0x57   :  { %525 = vmatprep.subr.bf16.mxu0 %v680_v0 }
  0x59   :  { %502 = vmatmul.mubr.bf16.vlgmr.msra.gmra.mrb[0].mxu0 %v65_v17 }
  0x5a   :  { %541 = vmatprep.mubr.msk.bf16.mxu0 %vm681_vm0, %v680_v0  ;;  %526 = vmatpush3.bf16.msra.mxu0 %v571_v20 }
  0x5b   :  { %527 = vmatprep.subr.bf16.mxu0 %v680_v0 }
  0x5e   :  { %528 = vmatpush3.bf16.msra.mxu0 %v572_v21 }
  0x5f   :  { %529 = vmatprep.subr.bf16.mxu0 %v680_v0 }
  0x62   :  { %530 = vmatpush3.bf16.msra.mxu0 %v573_v22 }
  0x63   :  { %531 = vmatprep.subr.bf16.mxu0 %v680_v0 }
  0x66   :  { %532 = vmatpush3.bf16.msra.mxu0 %v574_v23 }
  0x67   :  { %533 = vmatprep.subr.bf16.mxu0 %v680_v0 }
  0x6a   :  { %534 = vmatpush3.bf16.msra.mxu0 %v575_v24 }
  0x6b   :  { %535 = vmatprep.subr.bf16.mxu0 %v680_v0 }
  0x6e   :  { %536 = vmatpush3.bf16.msra.mxu0 %v576_v25 }
  0x6f   :  { %537 = vmatprep.subr.bf16.mxu0 %v680_v0 }
  0x72   :  { %538 = vmatpush3.bf16.msra.mxu0 %v577_v36 }
  0x73   :  { %539 = vmatprep.subr.bf16.mxu0 %v680_v0 }
  0x76   :  { %540 = vmatpush3.bf16.msra.mxu0 %v578_v37 }
 0x12c   :  { %v171_v27 = vpop.f32.mrb[0].mxu0 }
 0x12d   :  { %v172_v28 = vadd.f32 %v430_v26, %v171_v27  ;;  %v503_v29 = vpop.f32.mrb[1].mxu0 }
 0x12e   :  { %v174_v30 = vpop.f32.mrb[2].mxu0 }
 0x12f   :  { %v175_v31 = vadd.f32 %v430_v26, %v174_v30  ;;  %v504_v32 = vpop.f32.mrb[3].mxu0  ;;  %v178_v33 = vmax.f32 %v172_v28, 0.0 }
 0x131   :  { %v179_v34 = vmax.f32 %v175_v31, 0.0 }
 0x133   :  { %v180_v35 = vpack.c.bf16 %v179_v34, %v178_v33 }
 0x135   :  { %522 = vmatmul.mubr.bf16.vlgmr.msra.gmra.mrb[0].mxu1 %v180_v35 }
 0x208   :  { %v288_v39 = vpop.f32.mrb[0].mxu1 }
 0x209   :  { %v289_v40 = vadd.f32 %v440_v38, %v288_v39  ;;  %v523_v41 = vpop.f32.mrb[1].mxu1 }
 0x20a   :  { %v291_v42 = vpop.f32.mrb[2].mxu1 }
 0x20b   :  { %v292_v43 = vadd.f32 %v440_v38, %v291_v42  ;;  %v524_v44 = vpop.f32.mrb[3].mxu1  ;;  %v295_v45 = vmax.f32 %v289_v40, 0.0 }
 0x20d   :  { %v296_v46 = vmax.f32 %v292_v43, 0.0 }
 0x20f   :  { %v297_v47 = vpack.c.bf16 %v296_v46, %v295_v45 }
 0x211   :  { %542 = vmatmul.mubr.bf16.vlgmr.msra.gmra.mrb[4].mxu0 %v297_v47 }
 0x2e4   :  { %v403_v49 = vpop.f32.mrb[4].mxu0 }
 0x2e5   :  { %v404_v50 = vadd.f32 %v449_v48, %v403_v49  ;;  %v543_v51 = vpop.f32.mrb[5].mxu0 }
 0x2e6   :  { %v406_v52 = vpop.f32.mrb[6].mxu0 }
 0x2e7   :  { %410 = vst [vmem:[#allocation8] sm:$0xff] %v404_v50  ;;  %v407_v53 = vadd.f32 %v449_v48, %v406_v52  ;;  %v544_v54 = vpop.f32.mrb[7].mxu0 }
 0x2e9   :  { %411 = vst [vmem:[#allocation8 + $0x8] sm:$0xff] %v407_v53 }
 0x2ea   :  { %656 = shalt.err (!%p653_p0)
}
 0x2eb   :  { %s657_s14 = scalar_lea.hbm %s817_s5, 256 }
 0x2ec   :  { %p658_p1 = scmp.ne.s32.totalorder %s817_s5, %s657_s14  ;;  %p661_p2 = scmp.lt.u32.totalorder %s657_s14, %s817_s5 }
 0x2ee   :  { %p663_p3 = pnand %p661_p2, %p658_p1 }
 0x2f0   :  { %666 = shalt.err (!%p663_p3)
}
 0x2f1   :  { %423 = dma.vmem_to_hbm [thread:$0]  %s418_s12, 256, %s817_s5, [#allocation4], %s677_s1, %s677_s1, %s678_s17  }
 0x2f2   :  { %671 = dma.done.wait [#allocation4], 256  }
 0x2f3   :  { %672 = vsyncadd [#allocation4], 4294967040 }
 0x2f4   :  { %427 = vsyncpa [#allocation3], 1 }
 0x2f5   :  { %428 = vsyncpa [#allocation6], 1 }
 0x2f6   :  { %429 = vsyncpa [#allocation4], 1 }

// kernel: tpu_custom_call.1
= control target key start
LH: loop header
LB: loop body
LE: loop exit
PB: predicated region body
PF: predicated region fallthrough
CT: control target
= control target key end

     0   :  { %10 = vsyncpa [#allocation3], 0  ;;  %s812_s0 = inlined_call_operand.hbm [shape: f32[16,128], index: 0, kind: input, shape index: {}]   ;;  %s813_s1 = inlined_call_operand.hbm [shape: bf16[2,128,128], index: 1, kind: input, shape index: {}]   ;;  %s814_s2 = inlined_call_operand.vmem [shape: f32[2,1,128], index: 2, kind: input, shape index: {}]   ;;  %s815_s3 = inlined_call_operand.hbm [shape: bf16[128,128], index: 3, kind: input, shape index: {}]   ;;  %s816_s4 = inlined_call_operand.vmem [shape: f32[1,128], index: 4, kind: input, shape index: {}]   ;;  %s817_s5 = inlined_call_operand.hbm [shape: f32[16,128], index: 5, kind: output, shape index: {}]  }
   0x1   :  { %11 = vsyncpa [#allocation6], 0 }
   0x2   :  { %12 = vsyncpa [#allocation4], 0  ;;  %s673_s18 = smov [#allocation5]   ;;  %s579_s22 = scalar_lea.hbm %s813_s1, 2048 }
   0x3   :  { %s30_s19 = sshll.u32 %s673_s18, 4  ;;  %p580_p0 = scmp.ne.s32.totalorder %s813_s1, %s579_s22  ;;  %s31_s19 = int_to_ptr.vmem [resolvable:$true] %s30_s19 }
   0x4   :  { %p583_p1 = scmp.lt.u32.totalorder %s579_s22, %s813_s1 }
   0x6   :  { %p585_p2 = pnand %p583_p1, %p580_p0 }
   0x8   :  { %588 = shalt.err (!%p585_p2)
}
   0x9   :  { %s589_s27 = scalar_lea.vmem %s31_s19, 2048  ;;  %p594_p4 = scmp.lt.s32.totalorder %s31_s19, %s31_s19 }
   0xa   :  { %p590_p3 = scmp.ne.s32.totalorder %s31_s19, %s589_s27  ;;  %p595_p5 = scmp.lt.s32.totalorder %s589_s27, %s589_s27 }
   0xc   :  { %p596_p6 = por %p595_p5, %p594_p4 }
   0xe   :  { %p597_p7 = pnand %p596_p6, %p590_p3 }
  0x10   :  { %600 = shalt.err (!%p597_p7)
}
  0x11   :  { %s674_s28 = smov 64   ;;  %s675_s29 = smov 4  }
  0x12   :  { %36 = dma.hbm_to_vmem [thread:$0]  %s813_s1, 2048, %s31_s19, [#allocation6], %s674_s28, %s674_s28, %s675_s29  }
  0x13   :  { %s676_s7 = smov [#allocation2]   ;;  %s601_s11 = scalar_lea.hbm %s812_s0, 256 }
  0x14   :  { %s18_s8 = sshll.u32 %s676_s7, 4  ;;  %p602_p8 = scmp.ne.s32.totalorder %s812_s0, %s601_s11  ;;  %s19_s8 = int_to_ptr.vmem [resolvable:$true] %s18_s8 }
  0x15   :  { %p605_p9 = scmp.lt.u32.totalorder %s601_s11, %s812_s0 }
  0x17   :  { %p607_p10 = pnand %p605_p9, %p602_p8 }
  0x19   :  { %610 = shalt.err (!%p607_p10)
}
  0x1a   :  { %s611_s16 = scalar_lea.vmem %s19_s8, 256  ;;  %p616_p12 = scmp.lt.s32.totalorder %s19_s8, %s19_s8 }
  0x1b   :  { %p612_p11 = scmp.ne.s32.totalorder %s19_s8, %s611_s16  ;;  %p617_p13 = scmp.lt.s32.totalorder %s611_s16, %s611_s16 }
  0x1d   :  { %p618_p0 = por %p617_p13, %p616_p12 }
  0x1f   :  { %p619_p1 = pnand %p618_p0, %p612_p11 }
  0x21   :  { %622 = shalt.err (!%p619_p1)
}
  0x22   :  { %s677_s1 = smov 128   ;;  %s678_s17 = smov 8  }
  0x23   :  { %24 = dma.hbm_to_vmem [thread:$0]  %s812_s0, 256, %s19_s8, [#allocation3], %s677_s1, %s677_s1, %s678_s17  }
  0x24   :  { %s679_s20 = smov [#allocation7]   ;;  %s623_s24 = scalar_lea.hbm %s815_s3, 1024 }
  0x25   :  { %s44_s21 = sshll.u32 %s679_s20, 4  ;;  %p624_p2 = scmp.ne.s32.totalorder %s815_s3, %s623_s24  ;;  %s45_s21 = int_to_ptr.vmem [resolvable:$true] %s44_s21 }
  0x26   :  { %p627_p3 = scmp.lt.u32.totalorder %s623_s24, %s815_s3 }
  0x28   :  { %p629_p4 = pnand %p627_p3, %p624_p2 }
  0x2a   :  { %632 = shalt.err (!%p629_p4)
}
  0x2b   :  { %s633_s6 = scalar_lea.vmem %s45_s21, 1024  ;;  %p638_p6 = scmp.lt.s32.totalorder %s45_s21, %s45_s21 }
  0x2c   :  { %p634_p5 = scmp.ne.s32.totalorder %s45_s21, %s633_s6  ;;  %p639_p7 = scmp.lt.s32.totalorder %s633_s6, %s633_s6 }
  0x2e   :  { %p640_p8 = por %p639_p7, %p638_p6 }
  0x30   :  { %p641_p9 = pnand %p640_p8, %p634_p5 }
  0x32   :  { %644 = shalt.err (!%p641_p9)
}
  0x33   :  { %50 = dma.hbm_to_vmem [thread:$0]  %s815_s3, 1024, %s45_s21, [#allocation6], %s674_s28, %s674_s28, %s675_s29  }
  0x34   :  { %667 = dma.done.wait [#allocation3], 256  }
  0x35   :  { %668 = vsyncadd [#allocation3], 4294967040 }
  0x36   :  { %669 = dma.done.wait [#allocation6], 3072  }
  0x37   :  { %670 = vsyncadd [#allocation6], 4294964224  ;;  %v680_v0 = vmov 0.0   ;;  %vm681_vm0 = vmmov 0   ;;  %v555_v1 = vld [vmem:[#allocation5] sm:$0xff]   ;;  %v556_v2 = vld [vmem:[#allocation5 + $0x8] sm:$0xff]  }
  0x38   :  { %485 = vmatprep.subr.bf16.mxu0 %v680_v0  ;;  %501 = vmatprep.mubr.msk.bf16.mxu0 %vm681_vm0, %v680_v0  ;;  %v557_v3 = vld [vmem:[#allocation5 + $0x10] sm:$0xff]   ;;  %v563_v4 = vld [vmem:[#allocation5 + $0x40] sm:$0xff]   ;;  %v558_v5 = vld [vmem:[#allocation5 + $0x18] sm:$0xff]   ;;  %s682_s11 = smov [#allocation8]  }
  0x39   :  { %505 = vmatprep.subr.bf16.mxu1 %v680_v0  ;;  %521 = vmatprep.mubr.msk.bf16.mxu1 %vm681_vm0, %v680_v0  ;;  %v564_v6 = vld [vmem:[#allocation5 + $0x48] sm:$0xff]   ;;  %v559_v7 = vld [vmem:[#allocation5 + $0x20] sm:$0xff]   ;;  %v565_v8 = vld [vmem:[#allocation5 + $0x50] sm:$0xff]   ;;  %s417_s12 = sshll.u32 %s682_s11, 4  ;;  %s418_s12 = int_to_ptr.vmem [resolvable:$true] %s417_s12 }
  0x3a   :  { %486 = vmatpush3.bf16.msra.mxu0 %v555_v1  ;;  %506 = vmatpush3.bf16.msra.mxu1 %v563_v4  ;;  %v560_v9 = vld [vmem:[#allocation5 + $0x28] sm:$0xff]   ;;  %v566_v10 = vld [vmem:[#allocation5 + $0x58] sm:$0xff]   ;;  %v561_v11 = vld [vmem:[#allocation5 + $0x30] sm:$0xff]   ;;  %p650_p11 = scmp.lt.s32.totalorder %s418_s12, %s418_s12 }
  0x3b   :  { %487 = vmatprep.subr.bf16.mxu0 %v680_v0  ;;  %507 = vmatprep.subr.bf16.mxu1 %v680_v0  ;;  %v567_v12 = vld [vmem:[#allocation5 + $0x60] sm:$0xff]   ;;  %v562_v13 = vld [vmem:[#allocation5 + $0x38] sm:$0xff]   ;;  %v63_v14 = vld [vmem:[#allocation2] sm:$0xff] }
  0x3c   :  { %v64_v15 = vld [vmem:[#allocation2 + $0x8] sm:$0xff]  ;;  %v568_v16 = vld [vmem:[#allocation5 + $0x68] sm:$0xff]   ;;  %v569_v18 = vld [vmem:[#allocation5 + $0x70] sm:$0xff]  }
  0x3d   :  { %v65_v17 = vpack.c.bf16 %v64_v15, %v63_v14  ;;  %v570_v19 = vld [vmem:[#allocation5 + $0x78] sm:$0xff]   ;;  %v571_v20 = vld [vmem:[#allocation7] sm:$0xff]   ;;  %v572_v21 = vld [vmem:[#allocation7 + $0x8] sm:$0xff]  }
  0x3e   :  { %488 = vmatpush3.bf16.msra.mxu0 %v556_v2  ;;  %508 = vmatpush3.bf16.msra.mxu1 %v564_v6  ;;  %v573_v22 = vld [vmem:[#allocation7 + $0x10] sm:$0xff]   ;;  %v574_v23 = vld [vmem:[#allocation7 + $0x18] sm:$0xff]   ;;  %v575_v24 = vld [vmem:[#allocation7 + $0x20] sm:$0xff]  }
  0x3f   :  { %489 = vmatprep.subr.bf16.mxu0 %v680_v0  ;;  %509 = vmatprep.subr.bf16.mxu1 %v680_v0  ;;  %v576_v25 = vld [vmem:[#allocation7 + $0x28] sm:$0xff]   ;;  %v430_v26 = vld [vmem:[%s814_s2] ss:$0 sm:$0xff]  ;;  %v578_v37 = vld [vmem:[#allocation7 + $0x38] sm:$0xff]  }
  0x40   :  { %v577_v36 = vld [vmem:[#allocation7 + $0x30] sm:$0xff]  }
  0x41   :  { %v440_v38 = vld [vmem:[%s814_s2 + $0x1] ss:$0 sm:$0xff]  ;;  %v449_v48 = vld [vmem:[%s816_s4] ss:$0 sm:$0xff]  ;;  %s645_s2 = scalar_lea.vmem %s418_s12, 256 }
  0x42   :  { %490 = vmatpush3.bf16.msra.mxu0 %v557_v3  ;;  %510 = vmatpush3.bf16.msra.mxu1 %v565_v8  ;;  %p646_p10 = scmp.ne.s32.totalorder %s418_s12, %s645_s2  ;;  %p651_p12 = scmp.lt.s32.totalorder %s645_s2, %s645_s2 }
  0x43   :  { %491 = vmatprep.subr.bf16.mxu0 %v680_v0  ;;  %511 = vmatprep.subr.bf16.mxu1 %v680_v0 }
  0x44   :  { %p652_p13 = por %p651_p12, %p650_p11 }
  0x46   :  { %492 = vmatpush3.bf16.msra.mxu0 %v558_v5  ;;  %512 = vmatpush3.bf16.msra.mxu1 %v566_v10  ;;  %p653_p0 = pnand %p652_p13, %p646_p10 }
  0x47   :  { %493 = vmatprep.subr.bf16.mxu0 %v680_v0  ;;  %513 = vmatprep.subr.bf16.mxu1 %v680_v0 }
  0x4a   :  { %494 = vmatpush3.bf16.msra.mxu0 %v559_v7  ;;  %514 = vmatpush3.bf16.msra.mxu1 %v567_v12 }
  0x4b   :  { %495 = vmatprep.subr.bf16.mxu0 %v680_v0  ;;  %515 = vmatprep.subr.bf16.mxu1 %v680_v0 }
  0x4e   :  { %496 = vmatpush3.bf16.msra.mxu0 %v560_v9  ;;  %516 = vmatpush3.bf16.msra.mxu1 %v568_v16 }
  0x4f   :  { %497 = vmatprep.subr.bf16.mxu0 %v680_v0  ;;  %517 = vmatprep.subr.bf16.mxu1 %v680_v0 }
  0x52   :  { %498 = vmatpush3.bf16.msra.mxu0 %v561_v11  ;;  %518 = vmatpush3.bf16.msra.mxu1 %v569_v18 }
  0x53   :  { %499 = vmatprep.subr.bf16.mxu0 %v680_v0  ;;  %519 = vmatprep.subr.bf16.mxu1 %v680_v0 }
  0x56   :  { %500 = vmatpush3.bf16.msra.mxu0 %v562_v13  ;;  %520 = vmatpush3.bf16.msra.mxu1 %v570_v19 }
  0x57   :  { %525 = vmatprep.subr.bf16.mxu0 %v680_v0 }
  0x59   :  { %502 = vmatmul.mubr.bf16.vlgmr.msra.gmra.mrb[0].mxu0 %v65_v17 }
  0x5a   :  { %541 = vmatprep.mubr.msk.bf16.mxu0 %vm681_vm0, %v680_v0  ;;  %526 = vmatpush3.bf16.msra.mxu0 %v571_v20 }
  0x5b   :  { %527 = vmatprep.subr.bf16.mxu0 %v680_v0 }
  0x5e   :  { %528 = vmatpush3.bf16.msra.mxu0 %v572_v21 }
  0x5f   :  { %529 = vmatprep.subr.bf16.mxu0 %v680_v0 }
  0x62   :  { %530 = vmatpush3.bf16.msra.mxu0 %v573_v22 }
  0x63   :  { %531 = vmatprep.subr.bf16.mxu0 %v680_v0 }
  0x66   :  { %532 = vmatpush3.bf16.msra.mxu0 %v574_v23 }
  0x67   :  { %533 = vmatprep.subr.bf16.mxu0 %v680_v0 }
  0x6a   :  { %534 = vmatpush3.bf16.msra.mxu0 %v575_v24 }
  0x6b   :  { %535 = vmatprep.subr.bf16.mxu0 %v680_v0 }
  0x6e   :  { %536 = vmatpush3.bf16.msra.mxu0 %v576_v25 }
  0x6f   :  { %537 = vmatprep.subr.bf16.mxu0 %v680_v0 }
  0x72   :  { %538 = vmatpush3.bf16.msra.mxu0 %v577_v36 }
  0x73   :  { %539 = vmatprep.subr.bf16.mxu0 %v680_v0 }
  0x76   :  { %540 = vmatpush3.bf16.msra.mxu0 %v578_v37 }
 0x12c   :  { %v171_v27 = vpop.f32.mrb[0].mxu0 }
 0x12d   :  { %v172_v28 = vadd.f32 %v430_v26, %v171_v27  ;;  %v503_v29 = vpop.f32.mrb[1].mxu0 }
 0x12e   :  { %v174_v30 = vpop.f32.mrb[2].mxu0 }
 0x12f   :  { %v175_v31 = vadd.f32 %v430_v26, %v174_v30  ;;  %v504_v32 = vpop.f32.mrb[3].mxu0  ;;  %v178_v33 = vmax.f32 %v172_v28, 0.0 }
 0x131   :  { %v179_v34 = vmax.f32 %v175_v31, 0.0 }
 0x133   :  { %v180_v35 = vpack.c.bf16 %v179_v34, %v178_v33 }
 0x135   :  { %522 = vmatmul.mubr.bf16.vlgmr.msra.gmra.mrb[0].mxu1 %v180_v35 }
 0x208   :  { %v288_v39 = vpop.f32.mrb[0].mxu1 }
 0x209   :  { %v289_v40 = vadd.f32 %v440_v38, %v288_v39  ;;  %v523_v41 = vpop.f32.mrb[1].mxu1 }
 0x20a   :  { %v291_v42 = vpop.f32.mrb[2].mxu1 }
 0x20b   :  { %v292_v43 = vadd.f32 %v440_v38, %v291_v42  ;;  %v524_v44 = vpop.f32.mrb[3].mxu1  ;;  %v295_v45 = vmax.f32 %v289_v40, 0.0 }
 0x20d   :  { %v296_v46 = vmax.f32 %v292_v43, 0.0 }
 0x20f   :  { %v297_v47 = vpack.c.bf16 %v296_v46, %v295_v45 }
 0x211   :  { %542 = vmatmul.mubr.bf16.vlgmr.msra.gmra.mrb[4].mxu0 %v297_v47 }
 0x2e4   :  { %v403_v49 = vpop.f32.mrb[4].mxu0 }
 0x2e5   :  { %v404_v50 = vadd.f32 %v449_v48, %v403_v49  ;;  %v543_v51 = vpop.f32.mrb[5].mxu0 }
 0x2e6   :  { %v406_v52 = vpop.f32.mrb[6].mxu0 }
 0x2e7   :  { %410 = vst [vmem:[#allocation8] sm:$0xff] %v404_v50  ;;  %v407_v53 = vadd.f32 %v449_v48, %v406_v52  ;;  %v544_v54 = vpop.f32.mrb[7].mxu0 }
 0x2e9   :  { %411 = vst [vmem:[#allocation8 + $0x8] sm:$0xff] %v407_v53 }
 0x2ea   :  { %656 = shalt.err (!%p653_p0)
}
 0x2eb   :  { %s657_s14 = scalar_lea.hbm %s817_s5, 256 }
 0x2ec   :  { %p658_p1 = scmp.ne.s32.totalorder %s817_s5, %s657_s14  ;;  %p661_p2 = scmp.lt.u32.totalorder %s657_s14, %s817_s5 }
 0x2ee   :  { %p663_p3 = pnand %p661_p2, %p658_p1 }
 0x2f0   :  { %666 = shalt.err (!%p663_p3)
}
 0x2f1   :  { %423 = dma.vmem_to_hbm [thread:$0]  %s418_s12, 256, %s817_s5, [#allocation4], %s677_s1, %s677_s1, %s678_s17  }
 0x2f2   :  { %671 = dma.done.wait [#allocation4], 256  }
 0x2f3   :  { %672 = vsyncadd [#allocation4], 4294967040 }
 0x2f4   :  { %427 = vsyncpa [#allocation3], 1 }
 0x2f5   :  { %428 = vsyncpa [#allocation6], 1 }
 0x2f6   :  { %429 = vsyncpa [#allocation4], 1 }

</bundles_post_ra>
